<compile_context>
chip_gen: v5e
topology: v5e:2x2
jax: 0.10.0
libtpu: 0.0.40
codegen_flags: <defaults>
</compile_context>

<pallas_src>
import functools

import jax
import jax.numpy as jnp
from jax import lax
from jax.experimental import pallas as pl
from jax.experimental.pallas import tpu as pltpu


_SQRT_HALF = 0.7071067811865476


def _cdiv(a, b):
    return (a + b - 1) // b


def _round_up(x, m):
    return _cdiv(x, m) * m


@functools.lru_cache(maxsize=1)
def _hw_info():
    """Returns (vmem_capacity_bytes, is_multi_tensorcore); conservative defaults on failure."""
    vmem_cap = 64 * 1024 * 1024        # safe for every generation (v7x physical VMEM)
    multi_tc = False
    try:
        vmem_cap = int(pltpu.get_tpu_info().vmem_capacity_bytes)
    except Exception:
        pass
    try:
        kind = jax.devices()[0].device_kind.lower()
        multi_tc = "v7" in kind        # v7x: 2 TensorCores/chip; v5e/v6e: 1
    except Exception:
        pass
    return vmem_cap, multi_tc


@functools.lru_cache(maxsize=1)
def _single_buffered_constants_supported():
    """One-time capability probe: does this build lower pipeline_mode=pl.Buffered(1)?"""
    try:
        def _probe_kernel(a_ref, c_ref, o_ref):
            o_ref[...] = a_ref[...] + c_ref[...]

        f = pl.pallas_call(
            _probe_kernel,
            out_shape=jax.ShapeDtypeStruct((16, 128), jnp.float32),
            grid_spec=pltpu.PrefetchScalarGridSpec(
                num_scalar_prefetch=0,
                grid=(2,),
                in_specs=[
                    pl.BlockSpec((8, 128), lambda i: (i, 0)),
                    pl.BlockSpec((8, 128), lambda i: (0, 0),
                                 pipeline_mode=pl.Buffered(1)),
                ],
                out_specs=pl.BlockSpec((8, 128), lambda i: (i, 0)),
            ),
        )
        jax.jit(f).lower(jnp.zeros((16, 128), jnp.float32),
                         jnp.zeros((8, 128), jnp.float32))
        return True
    except Exception:
        return False


def _gelu(x, approximate):
    if approximate:
        # tanh GELU routes through the EUP (its own bundle slot) -> near-free on v6e/v7x,
        # but deviates slightly from torch.nn.GELU's exact-erf default.
        return jax.nn.gelu(x, approximate=True)
    # Exact erf-based GELU: matches torch.nn.GELU() default semantics.
    return 0.5 * x * (1.0 + lax.erf(x * _SQRT_HALF))


def _mlp_kernel(x_ref, w1_ref, b1_ref, w2_ref, b2_ref, o_ref, *, approximate, compute_dtype):
    # x_ref : (tm, C)  native dtype    w1_ref: (C, H)     b1_ref: (1, H)  f32
    # w2_ref: (H, Co)                  b2_ref: (1, Co) f32   o_ref: (tm, Co) out_dtype
    # Cast the x tile in-kernel (hidden under the MXU) instead of a wrapper-side HBM pass.
    x = x_ref[...].astype(compute_dtype)
    h = jnp.dot(x, w1_ref[...], preferred_element_type=jnp.float32)
    h = h + b1_ref[...]
    h = _gelu(h, approximate)
    y = jnp.dot(h.astype(compute_dtype), w2_ref[...], preferred_element_type=jnp.float32)
    y = y + b2_ref[...]
    # dropout(p=0.0) -> identity (module default / eval semantics)
    o_ref[...] = y.astype(o_ref.dtype)


def _row_bytes(C, H, Cout, x_bytes, out_bytes, cd_bytes):
    # Per-row VMEM: double-buffered input + output blocks plus in-kernel intermediates
    # (bf16/f32 x tile, f32 h + GELU temps, cast h, f32 y) -- conservative.
    return (2 * x_bytes * C + 2 * out_bytes * Cout
            + cd_bytes * C + (8 + cd_bytes) * H + 4 * Cout)


def _pick_tm(M, tm_req, row_bytes, vmem_cap, multi_tc):
    budget = int(vmem_cap * 0.6)                       # generation-aware row-tile budget
    cap = max(16, (budget // row_bytes) // 16 * 16)
    tm = max(16, min(int(tm_req), cap))
    tm = min(tm, _round_up(M, 16))
    # Only on multi-TensorCore chips (v7x): keep >= 2 grid steps so the "parallel" row axis
    # can be sharded across both cores.  On v5e/v6e this would just add a grid step.
    if multi_tc and _cdiv(M, tm) < 2 and tm >= 32:
        half = _round_up(tm // 2, 16)
        if _cdiv(M, half) >= 2:
            tm = half
    return tm


@functools.partial(
    jax.jit,
    static_argnames=("tm", "approximate_gelu", "use_bf16", "out_dtype",
                     "single_buffer_weights", "vmem_cap", "multi_tc"))
def _mlp_pallas_impl(x, w1, b1, w2, b2, *, tm, approximate_gelu, use_bf16,
                     out_dtype, single_buffer_weights, vmem_cap, multi_tc):
    B, L, C = x.shape
    H = w1.shape[1]
    Cout = w2.shape[1]
    M = B * L

    out_dtype = jnp.dtype(out_dtype)
    compute_dtype = jnp.bfloat16 if use_bf16 else jnp.float32
    x_bytes = jnp.dtype(x.dtype).itemsize
    out_bytes = out_dtype.itemsize
    cd_bytes = jnp.dtype(compute_dtype).itemsize

    row_bytes = _row_bytes(C, H, Cout, x_bytes, out_bytes, cd_bytes)
    tm_eff = _pick_tm(M, tm, row_bytes, vmem_cap, multi_tc)
    grid_m = _cdiv(M, tm_eff)  # last block may be partial; Pallas clips its reads/writes

    # x keeps its native dtype; the (M, C) reshape is a free contiguous view (no HBM pass).
    x2 = x.reshape(M, C)
    # Weights/biases are tiny vs. x and are DMA'd into VMEM only once (constant index_map),
    # so a one-time cast here is negligible HBM traffic.
    w1c = w1.astype(compute_dtype)
    w2c = w2.astype(compute_dtype)
    b1f = b1.reshape(1, H).astype(jnp.float32)
    b2f = b2.reshape(1, Cout).astype(jnp.float32)

    def _const_spec(shape):
        # Constant index_map -> block never changes; single-buffer it to save VMEM.
        if single_buffer_weights:
            return pl.BlockSpec(shape, lambda i: (0,) * len(shape),
                                pipeline_mode=pl.Buffered(1))
        return pl.BlockSpec(shape, lambda i: (0,) * len(shape))

    wbuf = 1 if single_buffer_weights else 2
    est = (2 * tm_eff * C * x_bytes                                   # input blocks
           + 2 * tm_eff * Cout * out_bytes                            # output blocks
           + wbuf * ((C * H + H * Cout) * cd_bytes + (H + Cout) * 4)  # weights/biases
           + tm_eff * (cd_bytes * C + (8 + cd_bytes) * H + 4 * Cout)) # intermediates
    # Generation-aware VMEM limit: overrides small scoped defaults, keeps headroom.
    vmem_limit = int(min(int(vmem_cap * 0.8), max(32 * 1024 * 1024, 2 * est)))

    kernel = functools.partial(_mlp_kernel, approximate=approximate_gelu,
                               compute_dtype=compute_dtype)

    out = pl.pallas_call(
        kernel,
        out_shape=jax.ShapeDtypeStruct((M, Cout), out_dtype),
        grid_spec=pltpu.PrefetchScalarGridSpec(
            num_scalar_prefetch=0,
            grid=(grid_m,),
            in_specs=[
                pl.BlockSpec((tm_eff, C), lambda i: (i, 0)),
                _const_spec((C, H)),
                _const_spec((1, H)),
                _const_spec((H, Cout)),
                _const_spec((1, Cout)),
            ],
            out_specs=pl.BlockSpec((tm_eff, Cout), lambda i: (i, 0)),
        ),
        compiler_params=pltpu.CompilerParams(
            dimension_semantics=("parallel",),
            vmem_limit_bytes=vmem_limit,
        ),
    )(x2, w1c, b1f, w2c, b2f)

    return out.reshape(B, L, Cout)


def mlp_pallas(x, w1, b1, w2, b2, *, tm=4096, approximate_gelu=False,
               use_bf16=True, out_dtype=None):
    """Fused SwinIR Mlp forward: fc1 -> GELU -> drop(0)=id -> fc2 -> drop(0)=id.

    x: (B, L, C); w1: (C, H); b1: (H,); w2: (H, Cout); b2: (Cout,)
    (weights stored transposed w.r.t. torch.nn.Linear).

    approximate_gelu=True is the fast path (tanh GELU on the EUP, ~free on v6e/v7x);
    default False matches torch.nn.GELU's exact erf. use_bf16=False gives an fp32-parity
    path (no bf16 casts). out_dtype defaults to x.dtype; pass jnp.bfloat16 when the
    surrounding model runs bf16 activations to halve the output HBM stream.
    """
    vmem_cap, multi_tc = _hw_info()
    single = _single_buffered_constants_supported()
    return _mlp_pallas_impl(
        x, w1, b1, w2, b2,
        tm=tm, approximate_gelu=approximate_gelu, use_bf16=use_bf16,
        out_dtype=jnp.dtype(out_dtype if out_dtype is not None else x.dtype),
        single_buffer_weights=single, vmem_cap=vmem_cap, multi_tc=multi_tc)


def mlp_reference(x, w1, b1, w2, b2):
    h = jnp.einsum("blc,ch->blh", x, w1) + b1
    h = 0.5 * h * (1.0 + lax.erf(h * _SQRT_HALF))
    return jnp.einsum("blh,ho->blo", h, w2) + b2


if __name__ == "__main__":
    key = jax.random.PRNGKey(0)
    kx, k1, k2, k3, k4 = jax.random.split(key, 5)

    # Small shapes consistent with the module's forward: x is (B, L, C)
    B, L, C = 2, 64, 16
    hidden = 32
    out_features = C  # default: out_features = in_features

    x = jax.random.normal(kx, (B, L, C), dtype=jnp.float32)
    # parameters stored transposed vs. torch nn.Linear: (in, out)
    w1 = jax.random.normal(k1, (C, hidden), dtype=jnp.float32) * 0.02
    b1 = jax.random.normal(k2, (hidden,), dtype=jnp.float32) * 0.01
    w2 = jax.random.normal(k3, (hidden, out_features), dtype=jnp.float32) * 0.02
    b2 = jax.random.normal(k4, (out_features,), dtype=jnp.float32) * 0.01

    # 1) default fast path: bf16 operands, f32 MXU accumulation
    y = mlp_pallas(x, w1, b1, w2, b2)
    jax.block_until_ready(y)
    y_ref = mlp_reference(x, w1, b1, w2, b2)
    assert y.shape == (B, L, out_features)
    assert jnp.allclose(y, y_ref, atol=2e-2, rtol=2e-2), "bf16 path mismatch vs reference"

    # 2) fp32 path + ragged M (B*L not a multiple of the tile) -> exercises the partial block
    Lr = 61
    xr = jax.random.normal(kx, (B, Lr, C), dtype=jnp.float32)
    yr = mlp_pallas(xr, w1, b1, w2, b2, use_bf16=False)
    jax.block_until_ready(yr)
    yr_ref = mlp_reference(xr, w1, b1, w2, b2)
    assert yr.shape == (B, Lr, out_features)
    assert jnp.allclose(yr, yr_ref, atol=1e-3, rtol=1e-3), "fp32 path mismatch vs reference"

    print("KERNEL_OK")
</pallas_src>

<mosaic_0001>
module attributes {stable_mosaic.version = 11 : i64} {
  func.func @_mlp_kernel(%arg0: i32, %arg1: memref<128x16xf32, #tpu.memory_space<vmem>>, %arg2: memref<16x32xbf16, #tpu.memory_space<vmem>>, %arg3: memref<1x32xf32, #tpu.memory_space<vmem>>, %arg4: memref<32x16xbf16, #tpu.memory_space<vmem>>, %arg5: memref<1x16xf32, #tpu.memory_space<vmem>>, %arg6: memref<128x16xf32, #tpu.memory_space<vmem>>) attributes {dimension_semantics = [#tpu.dimension_semantics<parallel>], iteration_bounds = array<i64: 1>, scalar_prefetch = 0 : i64, scratch_operands = 0 : i64, tpu.core_type = #tpu.core_type<tc>, window_params = [{transform_indices = @transform_0, window_bounds = array<i64: 128, 16>}, {pipeline_mode = #tpu.pipeline_mode<synchronous>, transform_indices = @transform_1, window_bounds = array<i64: 16, 32>}, {pipeline_mode = #tpu.pipeline_mode<synchronous>, transform_indices = @transform_2, window_bounds = array<i64: 1, 32>}, {pipeline_mode = #tpu.pipeline_mode<synchronous>, transform_indices = @transform_3, window_bounds = array<i64: 32, 16>}, {pipeline_mode = #tpu.pipeline_mode<synchronous>, transform_indices = @transform_4, window_bounds = array<i64: 1, 16>}, {transform_indices = @transform_5, window_bounds = array<i64: 128, 16>}]} {
    %c0 = arith.constant 0 : index
    %c0_0 = arith.constant 0 : index
    %0 = vector.load %arg1[%c0, %c0_0] : memref<128x16xf32, #tpu.memory_space<vmem>>, vector<128x16xf32>
    %1 = arith.truncf %0 : vector<128x16xf32> to vector<128x16xbf16>
    %c0_1 = arith.constant 0 : index
    %c0_2 = arith.constant 0 : index
    %2 = vector.load %arg2[%c0_1, %c0_2] : memref<16x32xbf16, #tpu.memory_space<vmem>>, vector<16x32xbf16>
    %cst = arith.constant dense<0.000000e+00> : vector<128x32xf32>
    %3 = tpu.matmul %1, %2, %cst {dimension_numbers = #tpu.dot_dimension_numbers<[1], [0], [0], [1], [0, 0, 1, 1], [], []>} : vector<128x16xbf16>, vector<16x32xbf16>, vector<128x32xf32> -> vector<128x32xf32>
    %c0_3 = arith.constant 0 : index
    %c0_4 = arith.constant 0 : index
    %4 = vector.load %arg3[%c0_3, %c0_4] : memref<1x32xf32, #tpu.memory_space<vmem>>, vector<1x32xf32>
    %5 = vector.broadcast %4 : vector<1x32xf32> to vector<128x32xf32>
    %6 = arith.addf %3, %5 : vector<128x32xf32>
    %cst_5 = arith.constant 5.000000e-01 : f32
    %7 = vector.broadcast %cst_5 : f32 to vector<128x32xf32>
    %8 = arith.mulf %7, %6 : vector<128x32xf32>
    %cst_6 = arith.constant 0.707106769 : f32
    %9 = vector.broadcast %cst_6 : f32 to vector<128x32xf32>
    %10 = arith.mulf %6, %9 : vector<128x32xf32>
    %11 = math.erf %10 : vector<128x32xf32>
    %cst_7 = arith.constant 1.000000e+00 : f32
    %12 = vector.broadcast %cst_7 : f32 to vector<128x32xf32>
    %13 = arith.addf %12, %11 : vector<128x32xf32>
    %14 = arith.mulf %8, %13 : vector<128x32xf32>
    %15 = arith.truncf %14 : vector<128x32xf32> to vector<128x32xbf16>
    %c0_8 = arith.constant 0 : index
    %c0_9 = arith.constant 0 : index
    %16 = vector.load %arg4[%c0_8, %c0_9] : memref<32x16xbf16, #tpu.memory_space<vmem>>, vector<32x16xbf16>
    %cst_10 = arith.constant dense<0.000000e+00> : vector<128x16xf32>
    %17 = tpu.matmul %15, %16, %cst_10 {dimension_numbers = #tpu.dot_dimension_numbers<[1], [0], [0], [1], [0, 0, 1, 1], [], []>} : vector<128x32xbf16>, vector<32x16xbf16>, vector<128x16xf32> -> vector<128x16xf32>
    %c0_11 = arith.constant 0 : index
    %c0_12 = arith.constant 0 : index
    %18 = vector.load %arg5[%c0_11, %c0_12] : memref<1x16xf32, #tpu.memory_space<vmem>>, vector<1x16xf32>
    %19 = vector.broadcast %18 : vector<1x16xf32> to vector<128x16xf32>
    %20 = arith.addf %17, %19 : vector<128x16xf32>
    %c0_13 = arith.constant 0 : index
    %c0_14 = arith.constant 0 : index
    %21 = vector.load %arg6[%c0_13, %c0_14] : memref<128x16xf32, #tpu.memory_space<vmem>>, vector<128x16xf32>
    tpu.vector_store %arg6[%c0_13, %c0_14], %20 {strides = array<i32>} : memref<128x16xf32, #tpu.memory_space<vmem>>, vector<128x16xf32>,
    return
  }
  func.func @transform_0(%arg0: i32) -> (i32, i32) {
    %c0_i32 = arith.constant 0 : i32
    %c0_i32_0 = arith.constant 0 : i32
    return %arg0, %c0_i32 : i32, i32
  }
  func.func @transform_1(%arg0: i32) -> (i32, i32) {
    %c0_i32 = arith.constant 0 : i32
    %c0_i32_0 = arith.constant 0 : i32
    %c0_i32_1 = arith.constant 0 : i32
    return %c0_i32, %c0_i32_0 : i32, i32
  }
  func.func @transform_2(%arg0: i32) -> (i32, i32) {
    %c0_i32 = arith.constant 0 : i32
    %c0_i32_0 = arith.constant 0 : i32
    %c0_i32_1 = arith.constant 0 : i32
    return %c0_i32, %c0_i32_0 : i32, i32
  }
  func.func @transform_3(%arg0: i32) -> (i32, i32) {
    %c0_i32 = arith.constant 0 : i32
    %c0_i32_0 = arith.constant 0 : i32
    %c0_i32_1 = arith.constant 0 : i32
    return %c0_i32, %c0_i32_0 : i32, i32
  }
  func.func @transform_4(%arg0: i32) -> (i32, i32) {
    %c0_i32 = arith.constant 0 : i32
    %c0_i32_0 = arith.constant 0 : i32
    %c0_i32_1 = arith.constant 0 : i32
    return %c0_i32, %c0_i32_0 : i32, i32
  }
  func.func @transform_5(%arg0: i32) -> (i32, i32) {
    %c0_i32 = arith.constant 0 : i32
    %c0_i32_0 = arith.constant 0 : i32
    return %arg0, %c0_i32 : i32, i32
  }
}

</mosaic_0001>

<bundles_post_ra>
// kernel: _mlp_pallas_impl.1
= control target key start
LH: loop header
LB: loop body
LE: loop exit
PB: predicated region body
PF: predicated region fallthrough
CT: control target
= control target key end

     0   :  { %vm57_vm0 = vcmask 130048   ;;  %s1993_s1 = inlined_call_operand.vmem [shape: bf16[16,32], index: 1, kind: input, shape index: {}]   ;;  %s1994_s0 = inlined_call_operand.vmem [shape: f32[128,16], index: 0, kind: input, shape index: {}]   ;;  %s1995_s2 = inlined_call_operand.vmem [shape: f32[1,32], index: 2, kind: input, shape index: {}]   ;;  %s1996_s3 = inlined_call_operand.vmem [shape: bf16[32,16], index: 3, kind: input, shape index: {}]   ;;  %s1997_s4 = inlined_call_operand.vmem [shape: f32[1,16], index: 4, kind: input, shape index: {}]   ;;  %s1998_s5 = inlined_call_operand.vmem [shape: f32[128,16], index: 5, kind: output, shape index: {}]  }
   0x1   :  { %v1001_v0 = vld [vmem:[%s1993_s1] sm:$0xff]  ;;  %v22_v2 = vld [vmem:[%s1994_s0 + $0x8] sm:$0xff]  ;;  %v31_v4 = vld [vmem:[%s1994_s0 + $0x50] sm:$0xff] }
   0x2   :  { %v21_v1 = vld [vmem:[%s1994_s0] sm:$0xff]  ;;  %89 = vmatpush.bf16.msra.mxu0 %v1001_v0  ;;  %1004 = vmatpush.bf16.msra.mxu3 %v1001_v0  ;;  %v32_v5 = vld [vmem:[%s1994_s0 + $0x58] sm:$0xff]  ;;  %v23_v7 = vld [vmem:[%s1994_s0 + $0x10] sm:$0xff] }
   0x3   :  { %v37_v3 = vpack.c.bf16 %v22_v2, %v21_v1  ;;  %v42_v6 = vpack.c.bf16 %v32_v5, %v31_v4  ;;  %v24_v8 = vld [vmem:[%s1994_s0 + $0x18] sm:$0xff]  ;;  %v33_v9 = vld [vmem:[%s1994_s0 + $0x60] sm:$0xff]  ;;  %v34_v10 = vld [vmem:[%s1994_s0 + $0x68] sm:$0xff] }
   0x4   :  { %v38_v11 = vpack.c.bf16 %v24_v8, %v23_v7  ;;  %v43_v12 = vpack.c.bf16 %v34_v10, %v33_v9  ;;  %v25_v13 = vld [vmem:[%s1994_s0 + $0x20] sm:$0xff]  ;;  %v26_v14 = vld [vmem:[%s1994_s0 + $0x28] sm:$0xff]  ;;  %v35_v15 = vld [vmem:[%s1994_s0 + $0x70] sm:$0xff] }
   0x5   :  { %961 = vmatmul.msk.bf16.vlgmr.msra.gmra.mxu0 %vm57_vm0, %v37_v3  ;;  %966 = vmatmul.msk.bf16.vlgmr.msra.gmra.mxu3 %vm57_vm0, %v42_v6  ;;  %v36_v16 = vld [vmem:[%s1994_s0 + $0x78] sm:$0xff]  ;;  %v39_v17 = vpack.c.bf16 %v26_v14, %v25_v13  ;;  %v27_v19 = vld [vmem:[%s1994_s0 + $0x30] sm:$0xff]  ;;  %v29_v22 = vld [vmem:[%s1994_s0 + $0x40] sm:$0xff] }
   0x6   :  { %v44_v18 = vpack.c.bf16 %v36_v16, %v35_v15  ;;  %v28_v20 = vld [vmem:[%s1994_s0 + $0x38] sm:$0xff]  ;;  %v30_v23 = vld [vmem:[%s1994_s0 + $0x48] sm:$0xff]  ;;  %v1133_v26 = vld [vmem:[%s1995_s2] ss:$0 sm:$0xff] }
   0x7   :  { %v40_v21 = vpack.c.bf16 %v28_v20, %v27_v19  ;;  %v41_v24 = vpack.c.bf16 %v30_v23, %v29_v22 }
  0x15   :  { %962 = vmatmul.msk.bf16.gmra.mxu0 %vm57_vm0, %v38_v11  ;;  %967 = vmatmul.msk.bf16.gmra.mxu3 %vm57_vm0, %v43_v12 }
  0x25   :  { %963 = vmatmul.msk.bf16.gmra.mxu0 %vm57_vm0, %v39_v17  ;;  %968 = vmatmul.msk.bf16.gmra.mxu3 %vm57_vm0, %v44_v18 }
  0x35   :  { %964 = vmatmul.msk.bf16.gmra.mxu0 %vm57_vm0, %v40_v21 }
  0x45   :  { %965 = vmatmul.msk.bf16.gmra.mxu0 %vm57_vm0, %v41_v24 }
  0x82   :  { %v91_v25 = vpop.f32.mrf.mxu0 }
  0x83   :  { %v1136_v28 = vadd.f32 %v1133_v26, %v91_v25 }
  0x85   :  { %v1139_v29 = vmul.f32 0.70710677, %v1136_v28 }
  0x87   :  { %v163_v30 = vmul.f32 %v1139_v29, %v1139_v29 }
  0x88   :  { %v116_v61 = vpop.f32.mrf.mxu3 }
  0x89   :  { %v1146_v33 = vmin.f32 %v163_v30, 16.0  ;;  %v1184_v62 = vadd.f32 %v1133_v26, %v116_v61 }
  0x8a   :  { %v93_v27 = vpop.f32.mrf.mxu0 }
  0x8b   :  { %v1144_v31 = vadd.f32 %v1133_v26, %v93_v27  ;;  %v176_v35 = vmul.f32 3.8918573e-05, %v1146_v33  ;;  %v165_v59 = vmul.f32 2.1237322e-06, %v1146_v33  ;;  %v1194_v7 = vmul.f32 0.70710677, %v1184_v62 }
  0x8d   :  { %v1149_v34 = vmul.f32 0.70710677, %v1144_v31  ;;  %v177_v39 = vadd.f32 0.001143296, %v176_v35  ;;  %v166_v3 = vadd.f32 0.00028619796, %v165_v59  ;;  %v563_v16 = vmul.f32 %v1194_v7, %v1194_v7 }
  0x8f   :  { %v203_v36 = vmul.f32 %v1149_v34, %v1149_v34  ;;  %v178_v43 = vmul.f32 %v177_v39, %v1146_v33  ;;  %v167_v13 = vmul.f32 %v166_v3, %v1146_v33  ;;  %v1216_v27 = vmin.f32 %v563_v16, 16.0 }
  0x91   :  { %v1157_v40 = vmin.f32 %v203_v36, 16.0  ;;  %v179_v47 = vadd.f32 0.014752088, %v178_v43  ;;  %v168_v23 = vadd.f32 0.0036580483, %v167_v13 }
  0x92   :  { %v96_v32 = vpop.f32.mrf.mxu0 }
  0x93   :  { %v1155_v37 = vadd.f32 %v1133_v26, %v96_v32  ;;  %v216_v44 = vmul.f32 3.8918573e-05, %v1157_v40  ;;  %v180_v51 = vmul.f32 %v179_v47, %v1146_v33  ;;  %v205_v4 = vmul.f32 2.1237322e-06, %v1157_v40 }
  0x94   :  { %v169_v43 = vmul.f32 %v168_v23, %v1146_v33  ;;  %v576_v47 = vmul.f32 3.8918573e-05, %v1216_v27 }
  0x95   :  { %v1160_v41 = vmul.f32 0.70710677, %v1155_v37  ;;  %v217_v48 = vadd.f32 0.001143296, %v216_v44  ;;  %v181_v56 = vadd.f32 0.112945676, %v180_v51 }
  0x96   :  { %v206_v14 = vadd.f32 0.00028619796, %v205_v4 }
  0x97   :  { %v243_v45 = vmul.f32 %v1160_v41, %v1160_v41  ;;  %v218_v52 = vmul.f32 %v217_v48, %v1157_v40  ;;  %v182_v63 = vmul.f32 %v181_v56, %v1146_v33 }
  0x98   :  { %v207_v24 = vmul.f32 %v206_v14, %v1157_v40 }
  0x99   :  { %v1172_v49 = vmin.f32 %v243_v45, 16.0  ;;  %v219_v57 = vadd.f32 0.014752088, %v218_v52  ;;  %v183_v8 = vadd.f32 0.4994258, %v182_v63 }
  0x9a   :  { %v98_v38 = vpop.f32.mrf.mxu0  ;;  %v208_v44 = vadd.f32 0.0036580483, %v207_v24 }
  0x9b   :  { %v1163_v42 = vadd.f32 %v1133_v26, %v98_v38  ;;  %v256_v54 = vmul.f32 3.8918573e-05, %v1172_v49  ;;  %v220_v0 = vmul.f32 %v219_v57, %v1157_v40  ;;  %v184_v17 = vmul.f32 %v183_v8, %v1146_v33 }
  0x9c   :  { %v245_v19 = vmul.f32 2.1237322e-06, %v1172_v49  ;;  %v209_v56 = vmul.f32 %v208_v44, %v1157_v40  ;;  %v1003_v44 = vld [vmem:[%s1996_s3 + $0x8] sm:$0xff] }
  0x9d   :  { %v1170_v46 = vmul.f32 0.70710677, %v1163_v42  ;;  %v257_v58 = vadd.f32 0.001143296, %v256_v54  ;;  %v221_v9 = vadd.f32 0.112945676, %v220_v0  ;;  %894 = vmatpush.bf16.msra.mxu1 %v1003_v44  ;;  %1005 = vmatpush.bf16.msra.mxu2 %v1003_v44 }
  0x9e   :  { %v1218_v30 = vadd.f32 1.0, %v184_v17  ;;  %v246_v35 = vadd.f32 0.00028619796, %v245_v19  ;;  %v170_v54 = vadd.f32 0.05243302, %v169_v43 }
  0x9f   :  { %v283_v50 = vmul.f32 %v1170_v46, %v1170_v46  ;;  %v258_v1 = vmul.f32 %v257_v58, %v1172_v49  ;;  %v222_v18 = vmul.f32 %v221_v9, %v1157_v40  ;;  %v577_v58 = vadd.f32 0.001143296, %v576_v47 }
  0xa0   :  { %1009 = vrcp.f32 %v1218_v30  ;;  %v171_v4 = vmul.f32 %v170_v54, %v1146_v33  ;;  %vm191_vm2 = vweird.f32 %v1218_v30 }
  0xa1   :  { %v1179_v55 = vmin.f32 %v283_v50, 16.0  ;;  %v259_v10 = vadd.f32 0.014752088, %v258_v1  ;;  %v223_v32 = vadd.f32 0.4994258, %v222_v18  ;;  %v247_v50 = vmul.f32 %v246_v35, %v1172_v49 }
  0xa2   :  { %v101_v53 = vpop.f32.mrf.mxu0  ;;  %v578_v8 = vmul.f32 %v577_v58, %v1216_v27  ;;  %v172_v18 = vadd.f32 0.18741608, %v171_v4  ;;  %v565_v35 = vmul.f32 2.1237322e-06, %v1216_v27 }
  0xa3   :  { %v296_v60 = vmul.f32 3.8918573e-05, %v1179_v55  ;;  %v1190_v2 = vadd.f32 %v1133_v26, %v101_v53  ;;  %v260_v20 = vmul.f32 %v259_v10, %v1172_v49  ;;  %v224_v48 = vmul.f32 %v223_v32, %v1157_v40 }
  0xa4   :  { %v285_v13 = vmul.f32 2.1237322e-06, %v1179_v55  ;;  %v566_v58 = vadd.f32 0.00028619796, %v565_v35 }
  0xa5   :  { %v297_v5 = vadd.f32 0.001143296, %v296_v60  ;;  %v1197_v11 = vmul.f32 0.70710677, %v1190_v2  ;;  %v261_v36 = vadd.f32 0.112945676, %v260_v20 }
  0xa6   :  { %v1235_v59 = vadd.f32 1.0, %v224_v48  ;;  %v248_v60 = vadd.f32 0.0036580483, %v247_v50  ;;  %v1238_v3 = vpop.eup %1009  ;;  %v286_v32 = vadd.f32 0.00028619796, %v285_v13 }
  0xa7   :  { %v298_v15 = vmul.f32 %v297_v5, %v1179_v55  ;;  %v323_v21 = vmul.f32 %v1197_v11, %v1197_v11  ;;  %v262_v51 = vmul.f32 %v261_v36, %v1172_v49  ;;  %v210_v5 = vadd.f32 0.05243302, %v209_v56 }
  0xa8   :  { %v249_v10 = vmul.f32 %v248_v60, %v1172_v49  ;;  %1011 = vrcp.f32 %v1235_v59  ;;  %vm192_vm1 = vweird.f32 %v1238_v3  ;;  %vm231_vm5 = vweird.f32 %v1235_v59 }
  0xa9   :  { %v299_v25 = vadd.f32 0.014752088, %v298_v15  ;;  %v1220_v38 = vmin.f32 %v323_v21, 16.0  ;;  %v263_v63 = vadd.f32 0.4994258, %v262_v51  ;;  %v187_v15 = vmul.f32 %v1238_v3, %v1218_v30  ;;  %vm1319_vm4 = vmor %vm191_vm2, %vm192_vm1 }
  0xaa   :  { %v103_v6 = vpop.f32.mrf.mxu0  ;;  %v211_v19 = vmul.f32 %v210_v5, %v1157_v40  ;;  %v579_v21 = vadd.f32 0.014752088, %v578_v8  ;;  %v1269_v51 = vmul.f32 0.5, %v1136_v28  ;;  %v197_v8 = vand.u32 2147483648, %v1218_v30 }
  0xab   :  { %v1200_v12 = vadd.f32 %v1133_v26, %v103_v6  ;;  %v300_v45 = vmul.f32 %v299_v25, %v1179_v55  ;;  %v336_v52 = vmul.f32 3.8918573e-05, %v1220_v38  ;;  %v264_v16 = vmul.f32 %v263_v63, %v1172_v49  ;;  %v118_v63 = vpop.f32.mrf.mxu3 }
  0xac   :  { %v250_v25 = vadd.f32 0.05243302, %v249_v10  ;;  %v188_v36 = vsub.f32 1.0, %v187_v15  ;;  %v212_v47 = vadd.f32 0.18741608, %v211_v19  ;;  %v580_v60 = vmul.f32 %v579_v21, %v1216_v27 }
  0xad   :  { %v1213_v22 = vmul.f32 0.70710677, %v1200_v12  ;;  %v301_v57 = vadd.f32 0.112945676, %v300_v45  ;;  %v337_v0 = vadd.f32 0.001143296, %v336_v52  ;;  %v173_v45 = vmul.f32 %v172_v18, %v1146_v33 }
  0xae   :  { %v1266_v50 = vpop.eup %1011  ;;  %v1272_v52 = vmul.f32 0.5, %v1144_v31  ;;  %v251_v33 = vmul.f32 %v250_v25, %v1172_v49  ;;  %v189_v28 = vmul.f32 %v1238_v3, %v188_v36  ;;  %v287_v31 = vmul.f32 %v286_v32, %v1179_v55 }
  0xaf   :  { %v363_v39 = vmul.f32 %v1213_v22, %v1213_v22  ;;  %v302_v6 = vmul.f32 %v301_v57, %v1179_v55  ;;  %v338_v17 = vmul.f32 %v337_v0, %v1220_v38  ;;  %v1277_v57 = vmul.f32 0.5, %v1155_v37  ;;  %v1002_v0 = vld [vmem:[%s1996_s3] sm:$0xff] }
  0xb0   :  { %v174_v37 = vadd.f32 1.1283791, %v173_v45  ;;  %v227_v4 = vmul.f32 %v1266_v50, %v1235_v59  ;;  %895 = vmatpush.bf16.msra.mxu1 %v1002_v0  ;;  %1006 = vmatpush.bf16.msra.mxu2 %v1002_v0  ;;  %v1304_v15 = vadd.f32 %v1133_v26, %v118_v63  ;;  %v288_v18 = vadd.f32 0.0036580483, %v287_v31 }
  0xb1   :  { %v1232_v53 = vmin.f32 %v363_v39, 16.0  ;;  %v303_v20 = vadd.f32 0.4994258, %v302_v6  ;;  %v1259_v39 = vadd.f32 1.0, %v264_v16  ;;  %v339_v43 = vadd.f32 0.014752088, %v338_v17 }
  0xb2   :  { %v106_v61 = vpop.f32.mrf.mxu0  ;;  %v195_v6 = vand.u32 2147483647, %v1218_v30  ;;  %v190_v16 = vadd.f32 %v1238_v3, %v189_v28  ;;  %v252_v17 = vadd.f32 0.18741608, %v251_v33  ;;  %v228_v21 = vsub.f32 1.0, %v227_v4 }
  0xb3   :  { %v376_v1 = vmul.f32 3.8918573e-05, %v1232_v53  ;;  %v1244_v9 = vadd.f32 %v1133_v26, %v106_v61  ;;  %v304_v48 = vmul.f32 %v303_v20, %v1179_v55  ;;  %1013 = vrcp.f32 %v1259_v39 }
  0xb4   :  { %v340_v61 = vmul.f32 %v339_v43, %v1220_v38  ;;  %vm1311_vm3 = vcmp.eq.f32.partialorder %v195_v6, 8.507059e+37  ;;  %v198_v25 = vor.u32 1.1754944e-38, %v197_v8  ;;  %v175_v36 = vmul.f32 %v174_v37, %v1139_v29 }
  0xb5   :  { %v377_v14 = vadd.f32 0.001143296, %v376_v1  ;;  %v1256_v24 = vmul.f32 0.70710677, %v1244_v9  ;;  %v213_v1 = vmul.f32 %v212_v47, %v1157_v40  ;;  %v1291_v5 = vadd.f32 1.0, %v304_v48 }
  0xb6   :  { %v567_v40 = vmul.f32 %v566_v58, %v1216_v27  ;;  %v341_v19 = vadd.f32 0.112945676, %v340_v61  ;;  %v235_v43 = vand.u32 2147483647, %v1235_v59  ;;  %v325_v45 = vmul.f32 2.1237322e-06, %v1220_v38 }
  0xb7   :  { %v378_v23 = vmul.f32 %v377_v14, %v1232_v53  ;;  %v403_v56 = vmul.f32 %v1256_v24, %v1256_v24  ;;  %v1300_v14 = vmul.f32 0.5, %v1163_v42  ;;  %v214_v20 = vadd.f32 1.1283791, %v213_v1 }
  0xb8   :  { %1015 = vrcp.f32 %v1291_v5  ;;  %v568_v44 = vadd.f32 0.0036580483, %v567_v40  ;;  %v194_v47 = vsel %vm1319_vm4, %v1238_v3, %v190_v16  ;;  %v253_v48 = vmul.f32 %v252_v17, %v1172_v49 }
  0xb9   :  { %v379_v54 = vadd.f32 0.014752088, %v378_v23  ;;  %v1296_v13 = vmin.f32 %v403_v56, 16.0  ;;  %v1309_v23 = vpop.eup %1013  ;;  %v342_v29 = vmul.f32 %v341_v19, %v1220_v38  ;;  %v1332_v56 = vmul.f32 %v214_v20, %v1149_v34 }
  0xba   :  { %v229_v33 = vmul.f32 %v1266_v50, %v228_v21  ;;  %v267_v58 = vmul.f32 %v1309_v23, %v1259_v39  ;;  %v581_v28 = vadd.f32 0.112945676, %v580_v60  ;;  %v237_v31 = vand.u32 2147483648, %v1235_v59 }
  0xbb   :  { %v380_v10 = vmul.f32 %v379_v54, %v1232_v53  ;;  %v416_v35 = vmul.f32 3.8918573e-05, %v1296_v13  ;;  %v289_v54 = vmul.f32 %v288_v18, %v1179_v55  ;;  %v199_v63 = vsel %vm1311_vm3, %v198_v25, %v194_v47 }
  0xbc   :  { %vm1344_vm6 = vcmp.eq.f32.partialorder %v235_v43, 8.507059e+37  ;;  %v569_v0 = vmul.f32 %v568_v44, %v1216_v27  ;;  %v326_v37 = vadd.f32 0.00028619796, %v325_v45  ;;  %vm232_vm7 = vweird.f32 %v1266_v50 }
  0xbd   :  { %v381_v32 = vadd.f32 0.112945676, %v380_v10  ;;  %v417_v49 = vadd.f32 0.001143296, %v416_v35  ;;  %v254_v60 = vadd.f32 1.1283791, %v253_v48  ;;  %v230_v6 = vadd.f32 %v1266_v50, %v229_v33  ;;  %vm1367_vm8 = vmor %vm231_vm5, %vm232_vm7 }
  0xbe   :  { %v1340_v61 = vpop.eup %1015  ;;  %v290_v1 = vadd.f32 0.05243302, %v289_v54  ;;  %v343_v4 = vadd.f32 0.4994258, %v342_v29  ;;  %v268_v8 = vsub.f32 1.0, %v267_v58  ;;  %v582_v17 = vmul.f32 %v581_v28, %v1216_v27  ;;  %v108_v29 = vpop.f32.mrf.mxu0 }
  0xbf   :  { %v382_v3 = vmul.f32 %v381_v32, %v1232_v53  ;;  %v1352_v10 = vmul.f32 0.70710677, %v1304_v15  ;;  %v365_v40 = vmul.f32 2.1237322e-06, %v1232_v53  ;;  %v307_v16 = vmul.f32 %v1340_v61, %v1291_v5 }
  0xc0   :  { %v418_v19 = vmul.f32 %v417_v49, %v1296_v13  ;;  %v200_v20 = vmul.f32 %v199_v63, %v175_v36  ;;  %v238_v21 = vor.u32 1.1754944e-38, %v237_v31  ;;  %v1360_v42 = vmul.f32 0.5, %v1190_v2 }
  0xc1   :  { %v383_v18 = vadd.f32 0.4994258, %v382_v3  ;;  %v327_v25 = vmul.f32 %v326_v37, %v1220_v38  ;;  %v1372_v35 = vmul.f32 %v254_v60, %v1160_v41  ;;  %v291_v30 = vmul.f32 %v290_v1, %v1179_v55 }
  0xc2   :  { %v570_v36 = vadd.f32 0.05243302, %v569_v0  ;;  %v344_v43 = vmul.f32 %v343_v4, %v1220_v38  ;;  %v234_v2 = vsel %vm1367_vm8, %v1266_v50, %v230_v6  ;;  %v269_v44 = vmul.f32 %v1309_v23, %v268_v8 }
  0xc3   :  { %v603_v59 = vmul.f32 %v1352_v10, %v1352_v10  ;;  %v366_v45 = vadd.f32 0.00028619796, %v365_v40  ;;  %v308_v47 = vsub.f32 1.0, %v307_v16  ;;  %v583_v48 = vadd.f32 0.4994258, %v582_v17 }
  0xc4   :  { %v384_v41 = vmul.f32 %v383_v18, %v1232_v53  ;;  %v419_v54 = vadd.f32 0.014752088, %v418_v19  ;;  %v969_v33 = vclamps-f32 %v200_v20, 1.0  ;;  %v275_v58 = vand.u32 2147483647, %v1259_v39 }
  0xc5   :  { %v277_v28 = vand.u32 2147483648, %v1259_v39  ;;  %v328_v31 = vadd.f32 0.0036580483, %v327_v25  ;;  %v239_v50 = vsel %vm1344_vm6, %v238_v21, %v234_v2  ;;  %vm272_vm9 = vweird.f32 %v1309_v23 }
  0xc6   :  { %v292_v3 = vadd.f32 0.18741608, %v291_v30  ;;  %v1388_v49 = vadd.f32 1.0, %v344_v43  ;;  %v270_v63 = vadd.f32 %v1309_v23, %v269_v44  ;;  %v1391_v0 = vmin.f32 %v603_v59, 16.0  ;;  %v121_v59 = vpop.f32.mrf.mxu3 }
  0xc7   :  { %v367_v37 = vmul.f32 %v366_v45, %v1232_v53  ;;  %v1395_v60 = vadd.f32 %v1133_v26, %v108_v29  ;;  %v309_v1 = vmul.f32 %v1340_v61, %v308_v47  ;;  %v1399_v4 = vmul.f32 %v570_v36, %v1216_v27 }
  0xc8   :  { %v1401_v34 = vadd.f32 1.0, %v384_v41  ;;  %v420_v6 = vmul.f32 %v419_v54, %v1296_v13  ;;  %v803_v8 = vadd.f32 1.0, %v969_v33  ;;  %vm271_vm10 = vweird.f32 %v1259_v39 }
  0xc9   :  { %vm1405_vm11 = vcmp.eq.f32.partialorder %v275_v58, 8.507059e+37  ;;  %v329_v16 = vmul.f32 %v328_v31, %v1220_v38  ;;  %v240_v17 = vmul.f32 %v239_v50, %v1332_v56  ;;  %vm1413_vm12 = vmor %vm271_vm10, %vm272_vm9  ;;  %v278_v19 = vor.u32 1.1754944e-38, %v277_v28 }
  0xca   :  { %v293_v20 = vmul.f32 %v292_v3, %v1179_v55  ;;  %1017 = vrcp.f32 %v1388_v49  ;;  %v274_v39 = vsel %vm1413_vm12, %v1309_v23, %v270_v63  ;;  %v616_v21 = vmul.f32 3.8918573e-05, %v1391_v0 }
  0xcb   :  { %v368_v25 = vadd.f32 0.0036580483, %v367_v37  ;;  %v1424_v56 = vmul.f32 0.70710677, %v1395_v60  ;;  %v310_v32 = vadd.f32 %v1340_v61, %v309_v1  ;;  %vm312_vm13 = vweird.f32 %v1340_v61 }
  0xcc   :  { %1019 = vrcp.f32 %v1401_v34  ;;  %v421_v30 = vadd.f32 0.112945676, %v420_v6  ;;  %v315_v55 = vand.u32 2147483647, %v1291_v5  ;;  %v317_v36 = vand.u32 2147483648, %v1291_v5 }
  0xcd   :  { %v330_v43 = vadd.f32 0.05243302, %v329_v16  ;;  %v443_v23 = vmul.f32 %v1424_v56, %v1424_v56  ;;  %v279_v2 = vsel %vm1405_vm11, %v278_v19, %v274_v39  ;;  %vm311_vm14 = vweird.f32 %v1291_v5 }
  0xce   :  { %v584_v44 = vmul.f32 %v583_v48, %v1216_v27  ;;  %v405_v45 = vmul.f32 2.1237322e-06, %v1296_v13  ;;  %v1439_v47 = vmul.f32 %v803_v8, %v1269_v51  ;;  %vm1441_vm15 = vmor %vm311_vm14, %vm312_vm13  ;;  %v617_v54 = vadd.f32 0.001143296, %v616_v21 }
  0xcf   :  { %v369_v29 = vmul.f32 %v368_v25, %v1232_v53  ;;  %v1446_v33 = vmin.f32 %v443_v23, 16.0  ;;  %v970_v5 = vclamps-f32 %v240_v17, 1.0  ;;  %v294_v28 = vadd.f32 1.1283791, %v293_v20 }
  0xd0   :  { %v1448_v58 = vpop.eup %1017  ;;  %v314_v48 = vsel %vm1441_vm15, %v1340_v61, %v310_v32  ;;  %v422_v51 = vmul.f32 %v421_v30, %v1296_v13  ;;  %v280_v31 = vmul.f32 %v279_v2, %v1372_v35  ;;  %vm316_vm1 = vcmp.eq.f32.partialorder %v315_v55, 8.507059e+37 }
  0xd1   :  { %v318_v50 = vor.u32 1.1754944e-38, %v317_v36  ;;  %v331_v3 = vmul.f32 %v330_v43, %v1220_v38  ;;  %v605_v37 = vmul.f32 2.1237322e-06, %v1391_v0  ;;  %v1460_v1 = vadd.f32 %v1133_v26, %v121_v59 }
  0xd2   :  { %v1456_v63 = vpop.eup %1019  ;;  %v406_v6 = vadd.f32 0.00028619796, %v405_v45  ;;  %v456_v8 = vmul.f32 3.8918573e-05, %v1446_v33  ;;  %v347_v61 = vmul.f32 %v1448_v58, %v1388_v49  ;;  %v618_v35 = vmul.f32 %v617_v54, %v1391_v0  ;;  %v123_v54 = vpop.f32.mrf.mxu3 }
  0xd3   :  { %v319_v40 = vsel %vm316_vm1, %v318_v50, %v314_v48  ;;  %v370_v16 = vadd.f32 0.05243302, %v369_v29  ;;  %v295_v17 = vmul.f32 %v294_v28, %v1170_v46  ;;  %v423_v18 = vadd.f32 0.4994258, %v422_v51 }
  0xd4   :  { %v445_v19 = vmul.f32 2.1237322e-06, %v1446_v33  ;;  %v457_v20 = vadd.f32 0.001143296, %v456_v8  ;;  %v804_v39 = vadd.f32 1.0, %v970_v5  ;;  %v971_v21 = vclamps-f32 %v280_v31, 1.0 }
  0xd5   :  { %v332_v25 = vadd.f32 0.18741608, %v331_v3  ;;  %v387_v32 = vmul.f32 %v1456_v63, %v1401_v34  ;;  %v320_v30 = vmul.f32 %v319_v40, %v295_v17  ;;  %v606_v55 = vadd.f32 0.00028619796, %v605_v37 }
  0xd6   :  { %v407_v36 = vmul.f32 %v406_v6, %v1296_v13  ;;  %v458_v43 = vmul.f32 %v457_v20, %v1446_v33  ;;  %v1472_v23 = vadd.f32 1.0, %v584_v44  ;;  %v348_v2 = vsub.f32 1.0, %v347_v61  ;;  %v111_v61 = vpop.f32.mrf.mxu0 }
  0xd7   :  { %v619_v46 = vadd.f32 0.014752088, %v618_v35  ;;  %v1475_v59 = vmul.f32 0.70710677, %v1460_v1  ;;  %v371_v45 = vmul.f32 %v370_v16, %v1232_v53  ;;  %v424_v41 = vmul.f32 %v423_v18, %v1296_v13 }
  0xd8   :  { %v446_v29 = vadd.f32 0.00028619796, %v445_v19  ;;  %v459_v5 = vadd.f32 0.014752088, %v458_v43  ;;  %v820_v28 = vmul.f32 %v804_v39, %v1272_v52  ;;  %v1480_v48 = vadd.f32 1.0, %v971_v21 }
  0xd9   :  { %v333_v51 = vmul.f32 %v332_v25, %v1220_v38  ;;  %v388_v44 = vsub.f32 1.0, %v387_v32  ;;  %v972_v31 = vclamps-f32 %v320_v30, 1.0  ;;  %v1484_v50 = vmul.f32 %v606_v55, %v1391_v0 }
  0xda   :  { %v408_v3 = vadd.f32 0.0036580483, %v407_v36  ;;  %v460_v37 = vmul.f32 %v459_v5, %v1446_v33  ;;  %v349_v6 = vmul.f32 %v1448_v58, %v348_v2  ;;  %v620_v8 = vmul.f32 %v619_v46, %v1391_v0 }
  0xdb   :  { %v643_v40 = vmul.f32 %v1475_v59, %v1475_v59  ;;  %v1492_v52 = vadd.f32 %v1133_v26, %v123_v54  ;;  %v372_v38 = vadd.f32 0.18741608, %v371_v45  ;;  %v1494_v35 = vadd.f32 1.0, %v424_v41 }
  0xdc   :  { %v447_v16 = vmul.f32 %v446_v29, %v1446_v33  ;;  %v461_v17 = vadd.f32 0.112945676, %v460_v37  ;;  %v334_v18 = vadd.f32 1.1283791, %v333_v51  ;;  %vm351_vm2 = vweird.f32 %v1388_v49 }
  0xdd   :  { %v355_v19 = vand.u32 2147483647, %v1388_v49  ;;  %v389_v20 = vmul.f32 %v1456_v63, %v388_v44  ;;  %v357_v39 = vand.u32 2147483648, %v1388_v49  ;;  %v409_v21 = vmul.f32 %v408_v3, %v1296_v13 }
  0xde   :  { %v1503_v25 = vadd.f32 %v1133_v26, %v111_v61  ;;  %v835_v32 = vpack.c.bf16 %v820_v28, %v1439_v47  ;;  %v350_v30 = vadd.f32 %v1448_v58, %v349_v6  ;;  %vm352_vm3 = vweird.f32 %v1448_v58  ;;  %v113_v54 = vpop.f32.mrf.mxu0 }
  0xdf   :  { %v1508_v55 = vmin.f32 %v643_v40, 16.0  ;;  %v462_v36 = vmul.f32 %v461_v17, %v1446_v33  ;;  %v373_v43 = vmul.f32 %v372_v38, %v1232_v53  ;;  %1021 = vrcp.f32 %v1494_v35  ;;  %vm1520_vm6 = vmor %vm351_vm2, %vm352_vm3 }
  0xe0   :  { %v1514_v2 = vmul.f32 0.70710677, %v1492_v52  ;;  %v448_v46 = vadd.f32 0.0036580483, %v447_v16  ;;  %v390_v45 = vadd.f32 %v1456_v63, %v389_v20  ;;  %vm392_vm4 = vweird.f32 %v1456_v63  ;;  %v126_v20 = vpop.f32.mrf.mxu3 }
  0xe1   :  { %v463_v47 = vadd.f32 0.4994258, %v462_v36  ;;  %vm863_vm5 = vcmask 261120   ;;  %v806_v41 = vadd.f32 1.0, %v972_v31  ;;  %v397_v53 = vand.u32 2147483648, %v1401_v34 }
  0xe2   :  { %v410_v29 = vadd.f32 0.05243302, %v409_v21  ;;  %v1526_v5 = vmul.f32 0.70710677, %v1503_v25  ;;  %993 = vmatmul.msk.bf16.vlgmr.msra.gmra.mxu1 %vm863_vm5, %v835_v32  ;;  %v354_v28 = vsel %vm1520_vm6, %v1448_v58, %v350_v30  ;;  %vm391_vm7 = vweird.f32 %v1401_v34 }
  0xe3   :  { %v395_v49 = vand.u32 2147483647, %v1401_v34  ;;  %v464_v51 = vmul.f32 %v463_v47, %v1446_v33  ;;  %vm356_vm8 = vcmp.eq.f32.partialorder %v355_v19, 8.507059e+37  ;;  %v358_v44 = vor.u32 1.1754944e-38, %v357_v39  ;;  %vm1537_vm9 = vmor %vm391_vm7, %vm392_vm4 }
  0xe4   :  { %v656_v3 = vmul.f32 3.8918573e-05, %v1508_v55  ;;  %v449_v37 = vmul.f32 %v448_v46, %v1446_v33  ;;  %v374_v6 = vadd.f32 1.1283791, %v373_v43  ;;  %v394_v58 = vsel %vm1537_vm9, %v1456_v63, %v390_v45 }
  0xe5   :  { %v1546_v34 = vadd.f32 1.0, %v464_v51  ;;  %v483_v40 = vmul.f32 %v1526_v5, %v1526_v5  ;;  %v1550_v61 = vpop.eup %1021  ;;  %v359_v38 = vsel %vm356_vm8, %v358_v44, %v354_v28  ;;  %v398_v16 = vor.u32 1.1754944e-38, %v397_v53 }
  0xe6   :  { %v411_v17 = vmul.f32 %v410_v29, %v1296_v13  ;;  %v683_v19 = vmul.f32 %v1514_v2, %v1514_v2  ;;  %v335_v39 = vmul.f32 %v334_v18, %v1197_v11  ;;  %v621_v21 = vadd.f32 0.112945676, %v620_v8 }
  0xe7   :  { %vm396_vm10 = vcmp.eq.f32.partialorder %v395_v49, 8.507059e+37  ;;  %1023 = vrcp.f32 %v1546_v34  ;;  %v657_v32 = vadd.f32 0.001143296, %v656_v3  ;;  %v450_v30 = vadd.f32 0.05243302, %v449_v37 }
  0xe8   :  { %v399_v63 = vsel %vm396_vm10, %v398_v16, %v394_v58  ;;  %v1557_v36 = vmin.f32 %v483_v40, 16.0  ;;  %v1560_v43 = vadd.f32 0.18741608, %v1399_v4  ;;  %v360_v46 = vmul.f32 %v359_v38, %v335_v39 }
  0xe9   :  { %v375_v45 = vmul.f32 %v374_v6, %v1213_v22  ;;  %v427_v47 = vmul.f32 %v1550_v61, %v1494_v35  ;;  %v822_v11 = vmul.f32 %v806_v41, %v1300_v14  ;;  %1025 = vrcp.f32 %v1472_v23 }
  0xea   :  { %v412_v8 = vadd.f32 0.18741608, %v411_v17  ;;  %v1567_v18 = vmin.f32 %v683_v19, 16.0  ;;  %v608_v53 = vadd.f32 0.0036580483, %v1484_v50  ;;  %v622_v29 = vmul.f32 %v621_v21, %v1391_v0  ;;  %v128_v21 = vpop.f32.mrf.mxu3 }
  0xeb   :  { %v400_v4 = vmul.f32 %v399_v63, %v375_v45  ;;  %v496_v28 = vmul.f32 3.8918573e-05, %v1557_v36  ;;  %v821_v22 = vmul.f32 %v1480_v48, %v1277_v57  ;;  %v136_v49 = vmul.f32 0.5, %v1200_v12 }
  0xec   :  { %v658_v14 = vmul.f32 %v657_v32, %v1508_v55  ;;  %v451_v41 = vmul.f32 %v450_v30, %v1446_v33  ;;  %v973_v44 = vclamps-f32 %v360_v46, 1.0  ;;  %v428_v31 = vsub.f32 1.0, %v427_v47 }
  0xed   :  { %v1577_v51 = vpop.eup %1023  ;;  %v497_v3 = vadd.f32 0.001143296, %v496_v28  ;;  %v1580_v50 = vadd.f32 %v1133_v26, %v113_v54  ;;  %v413_v37 = vmul.f32 %v412_v8, %v1296_v13  ;;  %v696_v6 = vmul.f32 3.8918573e-05, %v1567_v18 }
  0xee   :  { %v467_v57 = vmul.f32 %v1577_v51, %v1546_v34  ;;  %v836_v12 = vpack.c.bf16 %v822_v11, %v821_v22  ;;  %v1587_v48 = vmul.f32 %v608_v53, %v1391_v0  ;;  %v1589_v58 = vadd.f32 0.4994258, %v622_v29 }
  0xef   :  { %v974_v40 = vclamps-f32 %v400_v4, 1.0  ;;  %v498_v38 = vmul.f32 %v497_v3, %v1557_v36  ;;  %v1592_v16 = vpop.eup %1025  ;;  %v1594_v17 = vadd.f32 0.014752088, %v658_v14  ;;  %v452_v19 = vadd.f32 0.18741608, %v451_v41 }
  0xf0   :  { %v468_v13 = vsub.f32 1.0, %v467_v57  ;;  %v1597_v39 = vadd.f32 %v1133_v26, %v126_v20  ;;  %v807_v63 = vadd.f32 1.0, %v973_v44  ;;  %v429_v32 = vmul.f32 %v1550_v61, %v428_v31 }
  0xf1   :  { %v499_v30 = vadd.f32 0.014752088, %v498_v38  ;;  %v1601_v46 = vmul.f32 0.70710677, %v1580_v50  ;;  %v414_v45 = vadd.f32 1.1283791, %v413_v37  ;;  %v1609_v29 = vadd.f32 %v1133_v26, %v128_v21 }
  0xf2   :  { %v697_v47 = vadd.f32 0.001143296, %v696_v6  ;;  %v469_v11 = vmul.f32 %v1577_v51, %v468_v13  ;;  %v485_v8 = vmul.f32 2.1237322e-06, %v1557_v36  ;;  %994 = vmatmul.msk.bf16.gmra.mxu1 %vm863_vm5, %v836_v12  ;;  %v808_v54 = vadd.f32 1.0, %v974_v40 }
  0xf3   :  { %v437_v20 = vand.u32 2147483648, %v1494_v35  ;;  %v500_v53 = vmul.f32 %v499_v30, %v1557_v36  ;;  %v453_v4 = vmul.f32 %v452_v19, %v1446_v33  ;;  %vm472_vm11 = vweird.f32 %v1577_v51 }
  0xf4   :  { %v470_v28 = vadd.f32 %v1577_v51, %v469_v11  ;;  %v1615_v22 = vmul.f32 0.70710677, %v1597_v39  ;;  %v430_v14 = vadd.f32 %v1550_v61, %v429_v32  ;;  %vm432_vm12 = vweird.f32 %v1550_v61 }
  0xf5   :  { %v477_v41 = vand.u32 2147483648, %v1546_v34  ;;  %v523_v44 = vmul.f32 %v1601_v46, %v1601_v46  ;;  %vm471_vm13 = vweird.f32 %v1546_v34  ;;  %v475_v26 = vand.u32 2147483647, %v1546_v34 }
  0xf6   :  { %v486_v33 = vadd.f32 0.00028619796, %v485_v8  ;;  %v501_v31 = vadd.f32 0.112945676, %v500_v53  ;;  %vm431_vm14 = vweird.f32 %v1494_v35  ;;  %v435_v3 = vand.u32 2147483647, %v1494_v35  ;;  %vm1627_vm15 = vmor %vm471_vm13, %vm472_vm11 }
  0xf7   :  { %v698_v37 = vmul.f32 %v697_v47, %v1567_v18  ;;  %v1632_v57 = vmul.f32 0.70710677, %v1609_v29  ;;  %v438_v12 = vor.u32 1.1754944e-38, %v437_v20  ;;  %v454_v40 = vadd.f32 1.1283791, %v453_v4  ;;  %vm1640_vm1 = vmor %vm431_vm14, %vm432_vm12 }
  0xf8   :  { %v474_v34 = vsel %vm1627_vm15, %v1577_v51, %v470_v28  ;;  %v502_v38 = vmul.f32 %v501_v31, %v1557_v36  ;;  %v824_v19 = vmul.f32 %v808_v54, %v136_v49  ;;  %v478_v13 = vor.u32 1.1754944e-38, %v477_v41 }
  0xf9   :  { %v723_v21 = vmul.f32 %v1615_v22, %v1615_v22  ;;  %v1646_v32 = vmin.f32 %v523_v44, 16.0  ;;  %v434_v30 = vsel %vm1640_vm1, %v1550_v61, %v430_v14  ;;  %vm476_vm2 = vcmp.eq.f32.partialorder %v475_v26, 8.507059e+37 }
  0xfa   :  { %v487_v51 = vmul.f32 %v486_v33, %v1557_v36  ;;  %v503_v49 = vadd.f32 0.4994258, %v502_v38  ;;  %v479_v47 = vsel %vm476_vm2, %v478_v13, %v474_v34  ;;  %v763_v11 = vmul.f32 %v1632_v57, %v1632_v57 }
  0xfb   :  { %v525_v8 = vmul.f32 2.1237322e-06, %v1646_v32  ;;  %v536_v54 = vmul.f32 3.8918573e-05, %v1646_v32  ;;  %v823_v20 = vmul.f32 %v807_v63, %v1360_v42  ;;  %v415_v53 = vmul.f32 %v414_v45, %v1256_v24 }
  0xfc   :  { %vm436_vm3 = vcmp.eq.f32.partialorder %v435_v3, 8.507059e+37  ;;  %v455_v4 = vmul.f32 %v454_v40, %v1424_v56  ;;  %v1659_v28 = vmin.f32 %v723_v21, 16.0  ;;  %v504_v14 = vmul.f32 %v503_v49, %v1557_v36 }
  0xfd   :  { %v439_v61 = vsel %vm436_vm3, %v438_v12, %v434_v30  ;;  %v526_v41 = vadd.f32 0.00028619796, %v525_v8  ;;  %v488_v26 = vadd.f32 0.0036580483, %v487_v51  ;;  %v537_v33 = vadd.f32 0.001143296, %v536_v54 }
  0xfe   :  { %v480_v44 = vmul.f32 %v479_v47, %v455_v4  ;;  %v837_v31 = vpack.c.bf16 %v824_v19, %v823_v20  ;;  %v699_v6 = vadd.f32 0.014752088, %v698_v37  ;;  %v1662_v34 = vadd.f32 1.0, %v504_v14 }
  0xff   :  { %v1664_v38 = vmin.f32 %v763_v11, 16.0  ;;  %v527_v24 = vmul.f32 %v526_v41, %v1646_v32  ;;  %v573_v42 = vmul.f32 %v1560_v43, %v1216_v27  ;;  %v624_v56 = vmul.f32 %v1589_v58, %v1391_v0 }
 0x100   :  { %v440_v63 = vmul.f32 %v439_v61, %v415_v53  ;;  %v538_v45 = vmul.f32 %v537_v33, %v1646_v32  ;;  %v587_v3 = vmul.f32 %v1592_v16, %v1472_v23  ;;  %v595_v37 = vand.u32 2147483647, %v1472_v23 }
 0x101   :  { %v660_v12 = vmul.f32 %v1594_v17, %v1508_v55  ;;  %1027 = vrcp.f32 %v1662_v34  ;;  %v610_v40 = vadd.f32 0.05243302, %v1587_v48  ;;  %v976_v19 = vclamps-f32 %v480_v44, 1.0 }
 0x102   :  { %v736_v27 = vmul.f32 3.8918573e-05, %v1659_v28  ;;  %v489_v43 = vmul.f32 %v488_v26, %v1557_v36  ;;  %995 = vmatmul.msk.bf16.gmra.mxu1 %vm863_vm5, %v837_v31  ;;  %v700_v58 = vmul.f32 %v699_v6, %v1567_v18  ;;  %v776_v35 = vmul.f32 3.8918573e-05, %v1664_v38 }
 0x103   :  { %v528_v13 = vadd.f32 0.0036580483, %v527_v24  ;;  %v539_v21 = vadd.f32 0.014752088, %v538_v45  ;;  %v574_v30 = vadd.f32 1.1283791, %v573_v42  ;;  %vm591_vm4 = vweird.f32 %v1472_v23 }
 0x104   :  { %v597_v17 = vand.u32 2147483648, %v1472_v23  ;;  %v1685_v51 = vadd.f32 1.0, %v624_v56  ;;  %v975_v49 = vclamps-f32 %v440_v63, 1.0  ;;  %v588_v48 = vsub.f32 1.0, %v587_v3 }
 0x105   :  { %v645_v47 = vmul.f32 2.1237322e-06, %v1508_v55  ;;  %v661_v11 = vadd.f32 0.112945676, %v660_v12  ;;  %v540_v8 = vmul.f32 %v539_v21, %v1646_v32  ;;  %v611_v54 = vmul.f32 %v610_v40, %v1391_v0 }
 0x106   :  { %v810_v20 = vadd.f32 1.0, %v976_v19  ;;  %v737_v53 = vadd.f32 0.001143296, %v736_v27  ;;  %v490_v4 = vadd.f32 0.05243302, %v489_v43  ;;  %v529_v44 = vmul.f32 %v528_v13, %v1646_v32 }
 0x107   :  { %v1691_v61 = vpop.eup %1027  ;;  %v701_v14 = vadd.f32 0.112945676, %v700_v58  ;;  %v777_v41 = vadd.f32 0.001143296, %v776_v35  ;;  %v541_v26 = vadd.f32 0.112945676, %v540_v8  ;;  %1029 = vrcp.f32 %v1685_v51 }
 0x108   :  { %v809_v33 = vadd.f32 1.0, %v975_v49  ;;  %v138_v31 = vmul.f32 0.5, %v1395_v60  ;;  %v507_v6 = vmul.f32 %v1691_v61, %v1662_v34  ;;  %v1699_v24 = vmul.f32 %v574_v30, %v1194_v7 }
 0x109   :  { %v662_v42 = vmul.f32 %v661_v11, %v1508_v55  ;;  %v137_v56 = vmul.f32 0.5, %v1244_v9  ;;  %v542_v63 = vmul.f32 %v541_v26, %v1646_v32  ;;  %v738_v3 = vmul.f32 %v737_v53, %v1659_v28 }
 0x10a   :  { %v826_v45 = vmul.f32 %v810_v20, %v138_v31  ;;  %v491_v12 = vmul.f32 %v490_v4, %v1557_v36  ;;  %v508_v40 = vsub.f32 1.0, %v507_v6  ;;  %v702_v60 = vmul.f32 %v701_v14, %v1567_v18 }
 0x10b   :  { %v778_v19 = vmul.f32 %v777_v41, %v1664_v38  ;;  %v530_v27 = vadd.f32 0.05243302, %v529_v44  ;;  %v543_v43 = vadd.f32 0.4994258, %v542_v63  ;;  %v589_v7 = vmul.f32 %v1592_v16, %v588_v48 }
 0x10c   :  { %v612_v58 = vadd.f32 0.18741608, %v611_v54  ;;  %v646_v35 = vadd.f32 0.00028619796, %v645_v47  ;;  %v825_v13 = vmul.f32 %v809_v33, %v137_v56  ;;  %vm592_vm6 = vweird.f32 %v1592_v16 }
 0x10d   :  { %v663_v9 = vadd.f32 0.4994258, %v662_v42  ;;  %v685_v21 = vmul.f32 2.1237322e-06, %v1567_v18  ;;  %v544_v30 = vmul.f32 %v543_v43, %v1646_v32  ;;  %v1712_v49 = vpop.eup %1029  ;;  %v739_v11 = vadd.f32 0.014752088, %v738_v3  ;;  %vm1729_vm7 = vmor %vm591_vm4, %vm592_vm6 }
 0x10e   :  { %v492_v8 = vadd.f32 0.18741608, %v491_v12  ;;  %v509_v20 = vmul.f32 %v1691_v61, %v508_v40  ;;  %v838_v53 = vpack.c.bf16 %v826_v45, %v825_v13  ;;  %v703_v4 = vadd.f32 0.4994258, %v702_v60 }
 0x10f   :  { %v779_v14 = vadd.f32 0.014752088, %v778_v19  ;;  %v531_v48 = vmul.f32 %v530_v27, %v1646_v32  ;;  %v1716_v47 = vadd.f32 1.0, %v544_v30  ;;  %v1719_v54 = vadd.f32 %v1592_v16, %v589_v7 }
 0x110   :  { %v1721_v41 = vor.u32 1.1754944e-38, %v597_v17  ;;  %v613_v44 = vmul.f32 %v612_v58, %v1391_v0  ;;  %v647_v26 = vmul.f32 %v646_v35, %v1508_v55  ;;  %v627_v31 = vmul.f32 %v1712_v49, %v1685_v51 }
 0x111   :  { %v664_v6 = vmul.f32 %v663_v9, %v1508_v55  ;;  %v686_v42 = vadd.f32 0.00028619796, %v685_v21  ;;  %1031 = vrcp.f32 %v1716_v47  ;;  %v740_v0 = vmul.f32 %v739_v11, %v1659_v28 }
 0x112   :  { %v493_v17 = vmul.f32 %v492_v8, %v1557_v36  ;;  %v510_v56 = vadd.f32 %v1691_v61, %v509_v20  ;;  %vm512_vm8 = vweird.f32 %v1691_v61  ;;  %996 = vmatmul.msk.bf16.gmra.mxu1 %vm863_vm5, %v838_v53  ;;  %v704_v63 = vmul.f32 %v703_v4, %v1567_v18 }
 0x113   :  { %v517_v45 = vand.u32 2147483648, %v1662_v34  ;;  %v780_v3 = vmul.f32 %v779_v14, %v1664_v38  ;;  %v532_v12 = vadd.f32 0.18741608, %v531_v48  ;;  %v594_v40 = vsel %vm1729_vm7, %v1592_v16, %v1719_v54 }
 0x114   :  { %v1749_v60 = vadd.f32 1.1283791, %v613_v44  ;;  %vm511_vm9 = vweird.f32 %v1662_v34  ;;  %v515_v36 = vand.u32 2147483647, %v1662_v34  ;;  %v628_v19 = vsub.f32 1.0, %v627_v31 }
 0x115   :  { %vm631_vm10 = vweird.f32 %v1685_v51  ;;  %v648_v27 = vadd.f32 0.0036580483, %v647_v26  ;;  %v687_v43 = vmul.f32 %v686_v42, %v1567_v18  ;;  %vm1755_vm11 = vmor %vm511_vm9, %vm512_vm8  ;;  %v1759_v58 = vadd.f32 1.0, %v664_v6 }
 0x116   :  { %v741_v35 = vadd.f32 0.112945676, %v740_v0  ;;  %v494_v13 = vadd.f32 1.1283791, %v493_v17  ;;  %v514_v9 = vsel %vm1755_vm11, %v1691_v61, %v510_v56  ;;  %v1764_v34 = vadd.f32 1.0, %v704_v63 }
 0x117   :  { %v1032_v21 = vpop.eup %1031  ;;  %v518_v30 = vor.u32 1.1754944e-38, %v517_v45  ;;  %v781_v11 = vadd.f32 0.112945676, %v780_v3  ;;  %v533_v8 = vmul.f32 %v532_v12, %v1646_v32  ;;  %vm1769_vm12 = vcmp.eq.f32.partialorder %v595_v37, 8.507059e+37 }
 0x118   :  { %vm632_vm13 = vweird.f32 %v1712_v49  ;;  %v635_v53 = vand.u32 2147483647, %v1685_v51  ;;  %vm516_vm14 = vcmp.eq.f32.partialorder %v515_v36, 8.507059e+37  ;;  %v547_v61 = vmul.f32 %v1032_v21, %v1716_v47 }
 0x119   :  { %v629_v4 = vmul.f32 %v1712_v49, %v628_v19  ;;  %v649_v14 = vmul.f32 %v648_v27, %v1508_v55  ;;  %v688_v48 = vadd.f32 0.0036580483, %v687_v43  ;;  %v519_v44 = vsel %vm516_vm14, %v518_v30, %v514_v9  ;;  %vm1793_vm1 = vmor %vm631_vm10, %vm632_vm13 }
 0x11a   :  { %1033 = vrcp.f32 %v1759_v58  ;;  %v742_v23 = vmul.f32 %v741_v35, %v1659_v28  ;;  %v495_v32 = vmul.f32 %v494_v13, %v1526_v5  ;;  %v548_v37 = vsub.f32 1.0, %v547_v61 }
 0x11b   :  { %1035 = vrcp.f32 %v1764_v34  ;;  %v782_v26 = vmul.f32 %v781_v11, %v1664_v38  ;;  %v534_v31 = vadd.f32 1.1283791, %v533_v8  ;;  %v557_v6 = vand.u32 2147483648, %v1716_v47 }
 0x11c   :  { %v520_v42 = vmul.f32 %v519_v44, %v495_v32  ;;  %v549_v0 = vmul.f32 %v1032_v21, %v548_v37  ;;  %vm552_vm15 = vweird.f32 %v1032_v21  ;;  %v555_v17 = vand.u32 2147483647, %v1716_v47 }
 0x11d   :  { %v630_v56 = vadd.f32 %v1712_v49, %v629_v4  ;;  %v637_v63 = vand.u32 2147483648, %v1685_v51  ;;  %v689_v45 = vmul.f32 %v688_v48, %v1567_v18  ;;  %v725_v5 = vmul.f32 2.1237322e-06, %v1659_v28 }
 0x11e   :  { %v743_v12 = vadd.f32 0.4994258, %v742_v23  ;;  %v765_v36 = vmul.f32 2.1237322e-06, %v1664_v38  ;;  %v550_v19 = vadd.f32 %v1032_v21, %v549_v0  ;;  %vm551_vm2 = vweird.f32 %v1716_v47 }
 0x11f   :  { %vm1799_vm3 = vcmp.eq.f32.partialorder %v635_v53, 8.507059e+37  ;;  %v650_v43 = vadd.f32 0.05243302, %v649_v14  ;;  %v783_v7 = vadd.f32 0.4994258, %v782_v26  ;;  %vm553_vm4 = vmor %vm551_vm2, %vm552_vm15  ;;  %v558_v35 = vor.u32 1.1754944e-38, %v557_v6 }
 0x120   :  { %v1803_v13 = vpop.eup %1033  ;;  %v977_v51 = vclamps-f32 %v520_v42, 1.0  ;;  %v535_v9 = vmul.f32 %v534_v31, %v1601_v46  ;;  %v554_v30 = vsel %vm553_vm4, %v1032_v21, %v550_v19  ;;  %vm556_vm6 = vcmp.eq.f32.partialorder %v555_v17, 8.507059e+37 }
 0x121   :  { %v1806_v11 = vpop.eup %1035  ;;  %v638_v8 = vor.u32 1.1754944e-38, %v637_v63  ;;  %v690_v61 = vadd.f32 0.05243302, %v689_v45  ;;  %v726_v47 = vadd.f32 0.00028619796, %v725_v5  ;;  %v559_v53 = vsel %vm556_vm6, %v558_v35, %v554_v30 }
 0x122   :  { %v634_v4 = vsel %vm1793_vm1, %v1712_v49, %v630_v56  ;;  %v744_v14 = vmul.f32 %v743_v12, %v1659_v28  ;;  %v766_v48 = vadd.f32 0.00028619796, %v765_v36  ;;  %v560_v44 = vmul.f32 %v559_v53, %v535_v9 }
 0x123   :  { %v599_v46 = vsel %vm1769_vm12, %v1721_v41, %v594_v40  ;;  %v651_v21 = vmul.f32 %v650_v43, %v1508_v55  ;;  %v667_v23 = vmul.f32 %v1803_v13, %v1759_v58  ;;  %v784_v49 = vmul.f32 %v783_v7, %v1664_v38 }
 0x124   :  { %v615_v32 = vmul.f32 %v1749_v60, %v1352_v10  ;;  %v707_v33 = vmul.f32 %v1806_v11, %v1764_v34  ;;  %v811_v37 = vadd.f32 1.0, %v977_v51  ;;  %v978_v26 = vclamps-f32 %v560_v44, 1.0 }
 0x125   :  { %v639_v16 = vsel %vm1799_vm3, %v638_v8, %v634_v4  ;;  %v691_v54 = vmul.f32 %v690_v61, %v1567_v18  ;;  %v727_v41 = vmul.f32 %v726_v47, %v1659_v28  ;;  %v139_v40 = vmul.f32 0.5, %v1503_v25 }
 0x126   :  { %v1833_v20 = vadd.f32 1.0, %v744_v14  ;;  %v767_v31 = vmul.f32 %v766_v48, %v1664_v38  ;;  %v140_v10 = vmul.f32 0.5, %v1580_v50  ;;  %v812_v60 = vadd.f32 1.0, %v978_v26 }
 0x127   :  { %v600_v6 = vmul.f32 %v599_v46, %v1699_v24  ;;  %v652_v42 = vadd.f32 0.18741608, %v651_v21  ;;  %v668_v0 = vsub.f32 1.0, %v667_v23  ;;  %v1838_v17 = vadd.f32 1.0, %v784_v49 }
 0x128   :  { %v640_v56 = vmul.f32 %v639_v16, %v615_v32  ;;  %v708_v63 = vsub.f32 1.0, %v707_v33  ;;  %v827_v45 = vmul.f32 %v811_v37, %v139_v40  ;;  %v828_v5 = vmul.f32 %v812_v60, %v140_v10 }
 0x129   :  { %v728_v3 = vadd.f32 0.0036580483, %v727_v41  ;;  %v692_v12 = vadd.f32 0.18741608, %v691_v54  ;;  %1037 = vrcp.f32 %v1833_v20  ;;  %v768_v25 = vadd.f32 0.0036580483, %v767_v31 }
 0x12a   :  { %v839_v36 = vpack.c.bf16 %v828_v5, %v827_v45  ;;  %v669_v19 = vmul.f32 %v1803_v13, %v668_v0  ;;  %1039 = vrcp.f32 %v1838_v17  ;;  %v979_v50 = vclamps-f32 %v600_v6, 1.0 }
 0x12b   :  { %v980_v24 = vclamps-f32 %v640_v56, 1.0  ;;  %v653_v27 = vmul.f32 %v652_v42, %v1508_v55  ;;  %v709_v43 = vmul.f32 %v1806_v11, %v708_v63  ;;  %vm671_vm7 = vweird.f32 %v1759_v58 }
 0x12c   :  { %997 = vmatmul.msk.bf16.vlgmr.msra.gmra.mxu2 %vm863_vm5, %v839_v36  ;;  %vm672_vm8 = vweird.f32 %v1803_v13  ;;  %v677_v7 = vand.u32 2147483648, %v1759_v58  ;;  %v729_v35 = vmul.f32 %v728_v3, %v1659_v28  ;;  %v693_v51 = vmul.f32 %v692_v12, %v1567_v18 }
 0x12d   :  { %vm711_vm9 = vweird.f32 %v1764_v34  ;;  %vm712_vm10 = vweird.f32 %v1806_v11  ;;  %v769_v55 = vmul.f32 %v768_v25, %v1664_v38  ;;  %v670_v9 = vadd.f32 %v1803_v13, %v669_v19  ;;  %vm1860_vm11 = vmor %vm671_vm7, %vm672_vm8 }
 0x12e   :  { %v675_v30 = vand.u32 2147483647, %v1759_v58  ;;  %v717_v8 = vand.u32 2147483648, %v1764_v34  ;;  %v141_v47 = vmul.f32 0.5, %v1184_v62  ;;  %v710_v18 = vadd.f32 %v1806_v11, %v709_v43  ;;  %vm1871_vm12 = vmor %vm711_vm9, %vm712_vm10 }
 0x12f   :  { %v1857_v61 = vpop.eup %1037  ;;  %v715_v4 = vand.u32 2147483647, %v1764_v34  ;;  %v813_v48 = vadd.f32 1.0, %v979_v50  ;;  %v142_v44 = vmul.f32 0.5, %v1304_v15  ;;  %v654_v58 = vadd.f32 1.1283791, %v653_v27 }
 0x130   :  { %v1866_v14 = vpop.eup %1039  ;;  %v730_v62 = vadd.f32 0.05243302, %v729_v35  ;;  %v814_v21 = vadd.f32 1.0, %v980_v24  ;;  %v678_v23 = vor.u32 1.1754944e-38, %v677_v7  ;;  %v694_v49 = vadd.f32 1.1283791, %v693_v51 }
 0x131   :  { %v770_v32 = vadd.f32 0.05243302, %v769_v55  ;;  %v674_v33 = vsel %vm1860_vm11, %v1803_v13, %v670_v9  ;;  %vm676_vm13 = vcmp.eq.f32.partialorder %v675_v30, 8.507059e+37  ;;  %v718_v37 = vor.u32 1.1754944e-38, %v717_v8 }
 0x132   :  { %v714_v15 = vsel %vm1871_vm12, %v1806_v11, %v710_v18  ;;  %vm716_vm14 = vcmp.eq.f32.partialorder %v715_v4, 8.507059e+37  ;;  %v747_v34 = vmul.f32 %v1857_v61, %v1833_v20  ;;  %v787_v26 = vmul.f32 %v1866_v14, %v1838_v17 }
 0x133   :  { %v829_v16 = vmul.f32 %v813_v48, %v141_v47  ;;  %v655_v54 = vmul.f32 %v654_v58, %v1475_v59  ;;  %v731_v41 = vmul.f32 %v730_v62, %v1659_v28  ;;  %v830_v40 = vmul.f32 %v814_v21, %v142_v44 }
 0x134   :  { %v679_v13 = vsel %vm676_vm13, %v678_v23, %v674_v33  ;;  %v695_v31 = vmul.f32 %v694_v49, %v1514_v2  ;;  %v771_v10 = vmul.f32 %v770_v32, %v1664_v38  ;;  %v719_v60 = vsel %vm716_vm14, %v718_v37, %v714_v15 }
 0x135   :  { %v748_v11 = vsub.f32 1.0, %v747_v34  ;;  %v788_v6 = vsub.f32 1.0, %v787_v26  ;;  %v680_v42 = vmul.f32 %v679_v13, %v655_v54  ;;  %v732_v0 = vadd.f32 0.18741608, %v731_v41 }
 0x136   :  { %v720_v56 = vmul.f32 %v719_v60, %v695_v31  ;;  %v772_v63 = vadd.f32 0.18741608, %v771_v10  ;;  %v840_v45 = vpack.c.bf16 %v830_v40, %v829_v16  ;;  %vm751_vm15 = vweird.f32 %v1833_v20 }
 0x137   :  { %v749_v5 = vmul.f32 %v1857_v61, %v748_v11  ;;  %v789_v59 = vmul.f32 %v1866_v14, %v788_v6  ;;  %v981_v3 = vclamps-f32 %v680_v42, 1.0  ;;  %v733_v12 = vmul.f32 %v732_v0, %v1659_v28 }
 0x138   :  { %vm752_vm1 = vweird.f32 %v1857_v61  ;;  %v982_v2 = vclamps-f32 %v720_v56, 1.0  ;;  %v773_v25 = vmul.f32 %v772_v63, %v1664_v38  ;;  %vm791_vm2 = vweird.f32 %v1838_v17 }
 0x139   :  { %vm792_vm3 = vweird.f32 %v1866_v14  ;;  %v757_v36 = vand.u32 2147483648, %v1833_v20  ;;  %v797_v19 = vand.u32 2147483648, %v1838_v17  ;;  %v750_v50 = vadd.f32 %v1857_v61, %v749_v5  ;;  %vm1901_vm4 = vmor %vm751_vm15, %vm752_vm1 }
 0x13a   :  { %v755_v28 = vand.u32 2147483647, %v1833_v20  ;;  %v790_v27 = vadd.f32 %v1866_v14, %v789_v59  ;;  %v795_v38 = vand.u32 2147483647, %v1838_v17  ;;  %v143_v43 = vmul.f32 0.5, %v1460_v1  ;;  %vm1910_vm6 = vmor %vm791_vm2, %vm792_vm3 }
 0x13b   :  { %v144_v7 = vmul.f32 0.5, %v1492_v52  ;;  %v815_v51 = vadd.f32 1.0, %v981_v3  ;;  %v816_v55 = vadd.f32 1.0, %v982_v2  ;;  %v734_v9 = vadd.f32 1.1283791, %v733_v12 }
 0x13c   :  { %998 = vmatmul.msk.bf16.gmra.mxu2 %vm863_vm5, %v840_v45  ;;  %v774_v30 = vadd.f32 1.1283791, %v773_v25  ;;  %v758_v8 = vor.u32 1.1754944e-38, %v757_v36  ;;  %v798_v47 = vor.u32 1.1754944e-38, %v797_v19  ;;  %v754_v20 = vsel %vm1901_vm4, %v1857_v61, %v750_v50 }
 0x13d   :  { %vm756_vm7 = vcmp.eq.f32.partialorder %v755_v28, 8.507059e+37  ;;  %v794_v1 = vsel %vm1910_vm6, %v1866_v14, %v790_v27  ;;  %vm796_vm8 = vcmp.eq.f32.partialorder %v795_v38, 8.507059e+37  ;;  %v831_v52 = vmul.f32 %v815_v51, %v143_v43 }
 0x13e   :  { %v832_v17 = vmul.f32 %v816_v55, %v144_v7  ;;  %v735_v53 = vmul.f32 %v734_v9, %v1615_v22  ;;  %v775_v18 = vmul.f32 %v774_v30, %v1632_v57  ;;  %v759_v4 = vsel %vm756_vm7, %v758_v8, %v754_v20  ;;  %v1008_v57 = vld [vmem:[%s1997_s4] ss:$0 sm:$0xff] }
 0x13f   :  { %v799_v48 = vsel %vm796_vm8, %v798_v47, %v794_v1  ;;  %v145_v21 = vmul.f32 0.5, %v1597_v39  ;;  %v146_v14 = vmul.f32 0.5, %v1609_v29 }
 0x140   :  { %v760_v44 = vmul.f32 %v759_v4, %v735_v53  ;;  %v800_v58 = vmul.f32 %v799_v48, %v775_v18  ;;  %v841_v46 = vpack.c.bf16 %v832_v17, %v831_v52 }
 0x142   :  { %v983_v61 = vclamps-f32 %v760_v44, 1.0  ;;  %v984_v62 = vclamps-f32 %v800_v58, 1.0 }
 0x144   :  { %v817_v23 = vadd.f32 1.0, %v983_v61  ;;  %v818_v49 = vadd.f32 1.0, %v984_v62 }
 0x146   :  { %v833_v32 = vmul.f32 %v817_v23, %v145_v21  ;;  %v834_v33 = vmul.f32 %v818_v49, %v146_v14 }
 0x148   :  { %v842_v22 = vpack.c.bf16 %v834_v33, %v833_v32 }
 0x14c   :  { %999 = vmatmul.msk.bf16.gmra.mxu2 %vm863_vm5, %v841_v46 }
 0x15c   :  { %1000 = vmatmul.msk.bf16.gmra.mxu2 %vm863_vm5, %v842_v22 }
 0x15f   :  { %v897_v37 = vpop.f32.mrf.mxu1 }
 0x160   :  { %v898_v15 = vadd.f32 %v1008_v57, %v897_v37 }
 0x162   :  { %937 = vst.msk [vmem:[%s1998_s5] sm:$0xff] %vm57_vm0, %v898_v15 }
 0x167   :  { %v899_v39 = vpop.f32.mrf.mxu1 }
 0x168   :  { %v900_v34 = vadd.f32 %v1008_v57, %v899_v39 }
 0x16a   :  { %938 = vst.msk [vmem:[%s1998_s5 + $0x8] sm:$0xff] %vm57_vm0, %v900_v34 }
 0x16f   :  { %v902_v29 = vpop.f32.mrf.mxu1 }
 0x170   :  { %v903_v26 = vadd.f32 %v1008_v57, %v902_v29 }
 0x172   :  { %939 = vst.msk [vmem:[%s1998_s5 + $0x10] sm:$0xff] %vm57_vm0, %v903_v26 }
 0x177   :  { %v904_v16 = vpop.f32.mrf.mxu1 }
 0x178   :  { %v905_v54 = vadd.f32 %v1008_v57, %v904_v16 }
 0x17a   :  { %940 = vst.msk [vmem:[%s1998_s5 + $0x18] sm:$0xff] %vm57_vm0, %v905_v54 }
 0x17f   :  { %v907_v41 = vpop.f32.mrf.mxu1 }
 0x180   :  { %v908_v40 = vadd.f32 %v1008_v57, %v907_v41 }
 0x182   :  { %941 = vst.msk [vmem:[%s1998_s5 + $0x20] sm:$0xff] %vm57_vm0, %v908_v40 }
 0x187   :  { %v909_v13 = vpop.f32.mrf.mxu1 }
 0x188   :  { %v910_v31 = vadd.f32 %v1008_v57, %v909_v13 }
 0x18a   :  { %942 = vst.msk [vmem:[%s1998_s5 + $0x28] sm:$0xff] %vm57_vm0, %v910_v31 }
 0x18f   :  { %v912_v10 = vpop.f32.mrf.mxu1 }
 0x190   :  { %v913_v60 = vadd.f32 %v1008_v57, %v912_v10 }
 0x192   :  { %943 = vst.msk [vmem:[%s1998_s5 + $0x30] sm:$0xff] %vm57_vm0, %v913_v60 }
 0x197   :  { %v914_v11 = vpop.f32.mrf.mxu1 }
 0x198   :  { %v915_v6 = vadd.f32 %v1008_v57, %v914_v11 }
 0x19a   :  { %944 = vst.msk [vmem:[%s1998_s5 + $0x38] sm:$0xff] %vm57_vm0, %v915_v6 }
 0x1af   :  { %v917_v42 = vpop.f32.mrf.mxu2 }
 0x1b0   :  { %v918_v0 = vadd.f32 %v1008_v57, %v917_v42 }
 0x1b2   :  { %945 = vst.msk [vmem:[%s1998_s5 + $0x40] sm:$0xff] %vm57_vm0, %v918_v0 }
 0x1b7   :  { %v919_v56 = vpop.f32.mrf.mxu2 }
 0x1b8   :  { %v920_v63 = vadd.f32 %v1008_v57, %v919_v56 }
 0x1ba   :  { %946 = vst.msk [vmem:[%s1998_s5 + $0x48] sm:$0xff] %vm57_vm0, %v920_v63 }
 0x1bf   :  { %v922_v45 = vpop.f32.mrf.mxu2 }
 0x1c0   :  { %v923_v5 = vadd.f32 %v1008_v57, %v922_v45 }
 0x1c2   :  { %947 = vst.msk [vmem:[%s1998_s5 + $0x50] sm:$0xff] %vm57_vm0, %v923_v5 }
 0x1c7   :  { %v924_v59 = vpop.f32.mrf.mxu2 }
 0x1c8   :  { %v925_v3 = vadd.f32 %v1008_v57, %v924_v59 }
 0x1ca   :  { %948 = vst.msk [vmem:[%s1998_s5 + $0x58] sm:$0xff] %vm57_vm0, %v925_v3 }
 0x1cf   :  { %v927_v12 = vpop.f32.mrf.mxu2 }
 0x1d0   :  { %v928_v2 = vadd.f32 %v1008_v57, %v927_v12 }
 0x1d2   :  { %949 = vst.msk [vmem:[%s1998_s5 + $0x60] sm:$0xff] %vm57_vm0, %v928_v2 }
 0x1d7   :  { %v929_v25 = vpop.f32.mrf.mxu2 }
 0x1d8   :  { %v930_v36 = vadd.f32 %v1008_v57, %v929_v25 }
 0x1da   :  { %950 = vst.msk [vmem:[%s1998_s5 + $0x68] sm:$0xff] %vm57_vm0, %v930_v36 }
 0x1df   :  { %v932_v19 = vpop.f32.mrf.mxu2 }
 0x1e0   :  { %v933_v50 = vadd.f32 %v1008_v57, %v932_v19 }
 0x1e2   :  { %951 = vst.msk [vmem:[%s1998_s5 + $0x70] sm:$0xff] %vm57_vm0, %v933_v50 }
 0x1e7   :  { %v934_v24 = vpop.f32.mrf.mxu2 }
 0x1e8   :  { %v935_v28 = vadd.f32 %v1008_v57, %v934_v24 }
 0x1ea   :  { %952 = vst.msk [vmem:[%s1998_s5 + $0x78] sm:$0xff] %vm57_vm0, %v935_v28 }

</bundles_post_ra>
